<compile_context>
chip_gen: v7x
topology: tpu7x:2x2x1
jax: 0.10.0
libtpu: 0.0.40
codegen_flags: <defaults>
</compile_context>

<pallas_src>
import functools
import math

import jax
import jax.numpy as jnp
from jax.experimental import pallas as pl
from jax.experimental.pallas import tpu as pltpu


@functools.lru_cache(maxsize=None)
def _vmem_limit_bytes():
    """Scoped-VMEM budget: ~85% of physical per-core VMEM (generation aware)."""
    try:
        cap = int(pltpu.get_tpu_info().vmem_capacity_bytes)
    except Exception:
        cap = 64 * 1024 * 1024  # conservative fallback (compiles everywhere)
        return cap
    return int(cap * 0.85)


def _compiler_params(*semantics):
    return pltpu.CompilerParams(dimension_semantics=semantics,
                                vmem_limit_bytes=_vmem_limit_bytes())


def _fixed_spec(arr):
    """BlockSpec for a weight/bias identical at every grid step.

    Single-buffered (pl.Buffered(1)): the block index is constant so there is
    no steady-state DMA, and default double-buffering would just double the
    resident weight VMEM (critical at real ViT sizes on v7x).
    """
    nd = arr.ndim
    return pl.BlockSpec(arr.shape, lambda *_, _nd=nd: (0,) * _nd,
                        pipeline_mode=pl.Buffered(1))


def _layernorm(x, w, b, eps=1e-5):
    mu = jnp.mean(x, axis=-1, keepdims=True)
    var = jnp.mean((x - mu) ** 2, axis=-1, keepdims=True)
    return (x - mu) * jax.lax.rsqrt(var + eps) * w + b


# --------------------------------------------------------------- kernels ---


def linear_kernel(x_ref, w_ref, b_ref, o_ref):
    """o = x @ w + b  (bf16 MXU operands, f32 accumulate)."""
    x = x_ref[...].astype(jnp.bfloat16)
    o = jnp.dot(x, w_ref[...], preferred_element_type=jnp.float32) + b_ref[...]
    o_ref[...] = o.astype(o_ref.dtype)


def ln_qkv_kernel(x_ref, ln1w_ref, ln1b_ref, wqkv_ref, bqkv_ref, qkv_ref):
    """Pre-attention LayerNorm + ONE fused QKV projection for one row tile."""
    xn = _layernorm(x_ref[...], ln1w_ref[...], ln1b_ref[...])     # f32
    xb = xn.astype(jnp.bfloat16)                                  # bf16 MXU input
    qkv = jnp.dot(xb, wqkv_ref[...],
                  preferred_element_type=jnp.float32) + bqkv_ref[...]
    qkv_ref[...] = qkv.astype(jnp.bfloat16)                       # lane-dense store


def attn_kernel(q_ref, k_ref, v_ref, o_ref, *, scale):
    """Head-batched attention for one (batch, query-tile) grid step.

    q_ref: (H, tq, hs) bf16   k_ref/v_ref: (H, S, hs) bf16   o_ref: (H, tq, hs) bf16
    """
    q = q_ref[...]
    k = k_ref[...]
    v = v_ref[...]
    s = jnp.einsum("hqe,hke->hqk", q, k,
                   preferred_element_type=jnp.float32) * scale
    s = s - jnp.max(s, axis=-1, keepdims=True)
    # TODO(synk): on v6e/v7x (bf16 EUP) compute exp in bf16; kept f32 for v5e.
    p = jnp.exp(s)
    denom = jnp.sum(p, axis=-1, keepdims=True)
    p = p * pl.reciprocal(denom, approx=True)          # EUP slot, not a VPU divide
    ctx = jnp.einsum("hqk,hke->hqe", p.astype(jnp.bfloat16), v,
                     preferred_element_type=jnp.float32)
    o_ref[...] = ctx.astype(jnp.bfloat16)              # halves context writeback


def mlp_kernel(x_ref, attn_ref, ln2w_ref, ln2b_ref,
               w1_ref, b1_ref, w2_ref, b2_ref, o_ref):
    """Fused residual-1 + LayerNorm + SiLU MLP + residual-2 for one row tile."""
    h = x_ref[...] + attn_ref[...].astype(jnp.float32)  # residual 1 (fused)
    xn = _layernorm(h, ln2w_ref[...], ln2b_ref[...])
    m = jnp.dot(xn.astype(jnp.bfloat16), w1_ref[...],
                preferred_element_type=jnp.float32) + b1_ref[...]
    m = m * jax.nn.sigmoid(m)                           # SiLU (f32)
    m = jnp.dot(m.astype(jnp.bfloat16), w2_ref[...],
                preferred_element_type=jnp.float32) + b2_ref[...]
    o_ref[...] = h + m                                  # residual 2


# -------------------------------------------------------------- wrappers ---


def patch_embed_forward(patches2d, w, b, tm):
    N, K = patches2d.shape
    D = w.shape[1]
    assert N % tm == 0
    return pl.pallas_call(
        linear_kernel,
        grid=(N // tm,),
        in_specs=[pl.BlockSpec((tm, K), lambda i: (i, 0)),
                  _fixed_spec(w), _fixed_spec(b)],
        out_specs=pl.BlockSpec((tm, D), lambda i: (i, 0)),
        out_shape=jax.ShapeDtypeStruct((N, D), jnp.float32),
        compiler_params=_compiler_params("parallel"),
    )(patches2d, w, b)


def ln_qkv_forward(x, kp, tm):
    B, S, D = x.shape
    row_spec = pl.BlockSpec((None, tm, D), lambda b, r: (b, r, 0))
    qkv_spec = pl.BlockSpec((None, tm, 3 * D), lambda b, r: (b, r, 0))
    args = [kp["ln1w"], kp["ln1b"], kp["wqkv"], kp["bqkv"]]
    return pl.pallas_call(
        ln_qkv_kernel,
        grid=(B, S // tm),
        in_specs=[row_spec] + [_fixed_spec(a) for a in args],
        out_specs=qkv_spec,
        out_shape=jax.ShapeDtypeStruct((B, S, 3 * D), jnp.bfloat16),
        compiler_params=_compiler_params("parallel", "parallel"),
    )(x, *args)


def attn_forward(q, k, v, tq):
    B, H, S, hs = q.shape
    scale = 1.0 / math.sqrt(hs)
    q_spec = pl.BlockSpec((None, H, tq, hs), lambda b, t: (b, 0, t, 0))
    kv_spec = pl.BlockSpec((None, H, S, hs), lambda b, t: (b, 0, 0, 0))
    kernel = functools.partial(attn_kernel, scale=scale)
    return pl.pallas_call(
        kernel,
        grid=(B, S // tq),
        in_specs=[q_spec, kv_spec, kv_spec],
        out_specs=q_spec,
        out_shape=jax.ShapeDtypeStruct((B, H, S, hs), jnp.bfloat16),
        compiler_params=_compiler_params("parallel", "parallel"),
    )(q, k, v)


def mlp_forward(x, attn_out, kp, tm):
    B, S, D = x.shape
    row_spec_f32 = pl.BlockSpec((None, tm, D), lambda b, r: (b, r, 0))
    row_spec_bf16 = pl.BlockSpec((None, tm, D), lambda b, r: (b, r, 0))
    args = [kp["ln2w"], kp["ln2b"], kp["w1"], kp["b1"], kp["w2"], kp["b2"]]
    return pl.pallas_call(
        mlp_kernel,
        grid=(B, S // tm),
        in_specs=[row_spec_f32, row_spec_bf16] + [_fixed_spec(a) for a in args],
        out_specs=row_spec_f32,
        out_shape=jax.ShapeDtypeStruct((B, S, D), jnp.float32),
        compiler_params=_compiler_params("parallel", "parallel"),
    )(x, attn_out, *args)


def vit_layer_forward(x, kp, num_heads, tm):
    B, S, D = x.shape
    assert D % num_heads == 0 and S % tm == 0
    hs = D // num_heads

    qkv = ln_qkv_forward(x, kp, tm)                      # (B,S,3D) bf16
    q, k, v = jnp.split(qkv, 3, axis=-1)                 # thin XLA slicing

    # Head-major packing (B,S,D)->(B,H,S,hs): layout plumbing in XLA so the
    # attention kernel is reshape/transpose free (head-batched contraction).
    def split_heads(t):
        return t.reshape(B, S, num_heads, hs).transpose(0, 2, 1, 3)

    ctx = attn_forward(split_heads(q), split_heads(k), split_heads(v), tm)
    attn_out = ctx.transpose(0, 2, 1, 3).reshape(B, S, D)   # bf16 (half traffic)
    # residual 1 is fused into mlp_kernel (no separate x + attn_out pass).
    return mlp_forward(x, attn_out, kp, tm)


def extract_patches(image, patch_size):
    """(B,C,H,W) -> (B, num_patches, C*P*P), matching Conv2d(stride=kernel=P)."""
    B, C, Hh, Ww = image.shape
    P = patch_size
    Hp, Wp = Hh // P, Ww // P
    x = image.reshape(B, C, Hp, P, Wp, P)
    x = x.transpose(0, 2, 4, 1, 3, 5)                    # (B,Hp,Wp,C,P,P)
    return x.reshape(B, Hp * Wp, C * P * P)


def vision_transformer_forward(image, packed, cfg, tm):
    B = image.shape[0]
    D, P, H = cfg["emb_dim"], cfg["patch_size"], cfg["num_attn_heads"]
    num_patches = (cfg["image_size"] // P) ** 2

    # patch embedding (Pallas linear kernel); patches fed as bf16 (half the DMA)
    patches = extract_patches(image, P).reshape(B * num_patches, -1)
    patches = patches.astype(jnp.bfloat16)
    emb = patch_embed_forward(patches, packed["conv_w"], packed["conv_b"], tm)
    emb = emb.reshape(B, num_patches, D)

    # [patches, cls, registers] + positional embeddings (thin XLA glue)
    cls_tok = jnp.broadcast_to(packed["cls_token"], (B, 1, D))
    reg_tok = jnp.broadcast_to(packed["reg_tokens"],
                               (B, packed["reg_tokens"].shape[1], D))
    x = jnp.concatenate([emb, cls_tok, reg_tok], axis=1) + packed["pos_emb"]

    # transformer encoder (Pallas kernels)
    # TODO(synk): prefetch layer L+1 weights under layer L (cross-call future).
    for kp in packed["layers"]:
        x = vit_layer_forward(x, kp, H, tm)

    # classification head + softmax: tiny (B, num_classes) op, plain JAX.
    cls_emb = x[:, num_patches, :]
    logits = cls_emb @ packed["head_w"].T + packed["head_b"]
    return jax.nn.softmax(logits, axis=1), x


# ------------------------------------------------ parameters & reference ---


def _linear_init(key, fan_in, fan_out):
    kw, kb = jax.random.split(key)
    bound = 1.0 / math.sqrt(fan_in)
    w = jax.random.uniform(kw, (fan_out, fan_in), jnp.float32, -bound, bound)
    b = jax.random.uniform(kb, (fan_out,), jnp.float32, -bound, bound)
    return w, b


def init_vit_params(key, cfg):
    D, I = cfg["emb_dim"], cfg["intermediate_size"]
    C, P, R = cfg["in_channels"], cfg["patch_size"], cfg["num_registers"]
    S = (cfg["image_size"] // P) ** 2 + 1 + R
    keys = jax.random.split(key, 5 + cfg["num_layers"])

    conv_w, conv_b = _linear_init(keys[0], C * P * P, D)
    conv_w = conv_w.reshape(D, C, P, P)
    head_w, head_b = _linear_init(keys[1], D, cfg["num_classes"])

    def xavier(k, shape, fan_in, fan_out):
        bound = math.sqrt(6.0 / (fan_in + fan_out))
        return jax.random.uniform(k, shape, jnp.float32, -bound, bound)

    pos_emb = xavier(keys[2], (1, S, D), S, D)
    cls_token = xavier(keys[3], (1, 1, D), 1, D)
    reg_tokens = xavier(keys[4], (1, R, D), R, D)

    layers = []
    for lk in keys[5:]:
        ks = jax.random.split(lk, 5)
        Wq, bq = _linear_init(ks[0], D, D)
        Wk, bk = _linear_init(ks[1], D, D)
        Wv, bv = _linear_init(ks[2], D, D)
        W1, b1 = _linear_init(ks[3], D, I)
        W2, b2 = _linear_init(ks[4], I, D)
        layers.append(dict(
            Wq=Wq, bq=bq, Wk=Wk, bk=bk, Wv=Wv, bv=bv,
            W1=W1, b1=b1, W2=W2, b2=b2,
            ln1w=jnp.ones((D,), jnp.float32), ln1b=jnp.zeros((D,), jnp.float32),
            ln2w=jnp.ones((D,), jnp.float32), ln2b=jnp.zeros((D,), jnp.float32)))

    return dict(conv_w=conv_w, conv_b=conv_b, head_w=head_w, head_b=head_b,
                pos_emb=pos_emb, cls_token=cls_token, reg_tokens=reg_tokens,
                layers=layers)


def pack_params(params, cfg):
    D, H = cfg["emb_dim"], cfg["num_attn_heads"]
    hs = D // H
    # transpose_for_scores: PyTorch channel e*H + h belongs to head h, feature e.
    # Permute so the kernel sees head-contiguous channels (new ch = h*hs + e).
    perm = jnp.array([e * H + h for h in range(H) for e in range(hs)],
                     dtype=jnp.int32)

    def proj(W, b):
        return jnp.transpose(W[perm, :]), b[perm]

    layers = []
    for p in params["layers"]:
        wq, bq = proj(p["Wq"], p["bq"])
        wk, bk = proj(p["Wk"], p["bk"])
        wv, bv = proj(p["Wv"], p["bv"])
        wqkv = jnp.concatenate([wq, wk, wv], axis=1).astype(jnp.bfloat16)
        bqkv = jnp.concatenate([bq, bk, bv], axis=0).reshape(1, -1)
        layers.append(dict(
            ln1w=p["ln1w"].reshape(1, -1), ln1b=p["ln1b"].reshape(1, -1),
            wqkv=wqkv, bqkv=bqkv,
            ln2w=p["ln2w"].reshape(1, -1), ln2b=p["ln2b"].reshape(1, -1),
            w1=jnp.transpose(p["W1"]).astype(jnp.bfloat16),
            b1=p["b1"].reshape(1, -1),
            w2=jnp.transpose(p["W2"]).astype(jnp.bfloat16),
            b2=p["b2"].reshape(1, -1)))

    return dict(
        conv_w=jnp.transpose(params["conv_w"].reshape(D, -1)).astype(jnp.bfloat16),
        conv_b=params["conv_b"].reshape(1, -1),
        cls_token=params["cls_token"], reg_tokens=params["reg_tokens"],
        pos_emb=params["pos_emb"], head_w=params["head_w"],
        head_b=params["head_b"], layers=layers)


def ref_layer(x, p, num_heads):
    """Pure-JAX f32 ViTLayer mirroring the PyTorch module exactly."""
    B, S, D = x.shape
    hs = D // num_heads

    def ln(v, w, b):
        mu = v.mean(-1, keepdims=True)
        var = ((v - mu) ** 2).mean(-1, keepdims=True)
        return (v - mu) / jnp.sqrt(var + 1e-5) * w + b

    xn = ln(x, p["ln1w"], p["ln1b"])
    q = xn @ p["Wq"].T + p["bq"]
    k = xn @ p["Wk"].T + p["bk"]
    v = xn @ p["Wv"].T + p["bv"]

    def t4s(t):  # mirrors transpose_for_scores
        return jnp.transpose(t.reshape(B, S, hs, num_heads), (0, 3, 1, 2))

    qh, kh, vh = t4s(q), t4s(k), t4s(v)
    s = jnp.einsum("bhqe,bhke->bhqk", qh, kh) / math.sqrt(hs)
    a = jax.nn.softmax(s, axis=-1)
    o = jnp.einsum("bhqk,bhke->bhqe", a, vh)
    o = jnp.transpose(o, (0, 2, 1, 3)).reshape(B, S, D)
    h1 = x + o
    xn2 = ln(h1, p["ln2w"], p["ln2b"])
    m = xn2 @ p["W1"].T + p["b1"]
    m = m * jax.nn.sigmoid(m)
    m = m @ p["W2"].T + p["b2"]
    return h1 + m


def reference_forward(image, params, cfg):
    B = image.shape[0]
    D, P = cfg["emb_dim"], cfg["patch_size"]
    num_patches = (cfg["image_size"] // P) ** 2
    patches = extract_patches(image, P)
    x = patches @ params["conv_w"].reshape(D, -1).T + params["conv_b"]
    cls_tok = jnp.broadcast_to(params["cls_token"], (B, 1, D))
    reg_tok = jnp.broadcast_to(params["reg_tokens"],
                               (B, params["reg_tokens"].shape[1], D))
    x = jnp.concatenate([x, cls_tok, reg_tok], axis=1) + params["pos_emb"]
    for p in params["layers"]:
        x = ref_layer(x, p, cfg["num_attn_heads"])
    cls_emb = x[:, num_patches, :]
    logits = cls_emb @ params["head_w"].T + params["head_b"]
    return jax.nn.softmax(logits, axis=1), x


if __name__ == "__main__":
    cfg = dict(image_size=16, patch_size=4, emb_dim=32, num_attn_heads=4,
               intermediate_size=64, num_layers=2, num_registers=15,
               num_classes=16, in_channels=3)
    # seq len = 16 patches + 1 cls + 15 registers = 32 -> two 16-row tiles.
    TM = 16

    key = jax.random.PRNGKey(0)
    k_img, k_par = jax.random.split(key)
    image = jax.random.normal(
        k_img, (2, cfg["in_channels"], cfg["image_size"], cfg["image_size"]),
        jnp.float32)

    params = init_vit_params(k_par, cfg)
    packed = pack_params(params, cfg)

    probs, enc_out = vision_transformer_forward(image, packed, cfg, tm=TM)
    probs = jax.block_until_ready(probs)

    ref_probs, ref_enc = reference_forward(image, params, cfg)

    # Tolerances sized for bf16 MXU operands / bf16 context (f32 accumulation)
    # vs the f32 reference.
    enc_rel = float(jnp.linalg.norm(enc_out - ref_enc) / jnp.linalg.norm(ref_enc))
    prob_err = float(jnp.max(jnp.abs(probs - ref_probs)))
    assert enc_rel < 5e-2, f"encoder relative error too large: {enc_rel}"
    assert jnp.allclose(probs, ref_probs, atol=2e-2, rtol=0.0), \
        f"cls prob max abs err = {prob_err}"
    print("KERNEL_OK")
</pallas_src>

<mosaic_0001>
module attributes {stable_mosaic.version = 11 : i64} {
  func.func @linear_kernel(%arg0: i32, %arg1: memref<16x48xbf16, #tpu.memory_space<vmem>>, %arg2: memref<48x32xbf16, #tpu.memory_space<vmem>>, %arg3: memref<1x32xf32, #tpu.memory_space<vmem>>, %arg4: memref<16x32xf32, #tpu.memory_space<vmem>>) attributes {dimension_semantics = [#tpu.dimension_semantics<parallel>], iteration_bounds = array<i64: 2>, scalar_prefetch = 0 : i64, scratch_operands = 0 : i64, tpu.core_type = #tpu.core_type<tc>, window_params = [{transform_indices = @transform_0, window_bounds = array<i64: 16, 48>}, {pipeline_mode = #tpu.pipeline_mode<synchronous>, transform_indices = @transform_1, window_bounds = array<i64: 48, 32>}, {pipeline_mode = #tpu.pipeline_mode<synchronous>, transform_indices = @transform_2, window_bounds = array<i64: 1, 32>}, {transform_indices = @transform_3, window_bounds = array<i64: 16, 32>}]} {
    %c0 = arith.constant 0 : index
    %c0_0 = arith.constant 0 : index
    %0 = vector.load %arg1[%c0, %c0_0] : memref<16x48xbf16, #tpu.memory_space<vmem>>, vector<16x48xbf16>
    %c0_1 = arith.constant 0 : index
    %c0_2 = arith.constant 0 : index
    %1 = vector.load %arg2[%c0_1, %c0_2] : memref<48x32xbf16, #tpu.memory_space<vmem>>, vector<48x32xbf16>
    %cst = arith.constant dense<0.000000e+00> : vector<16x32xf32>
    %2 = tpu.matmul %0, %1, %cst {dimension_numbers = #tpu.dot_dimension_numbers<[1], [0], [0], [1], [0, 0, 1, 1], [], []>} : vector<16x48xbf16>, vector<48x32xbf16>, vector<16x32xf32> -> vector<16x32xf32>
    %c0_3 = arith.constant 0 : index
    %c0_4 = arith.constant 0 : index
    %3 = vector.load %arg3[%c0_3, %c0_4] : memref<1x32xf32, #tpu.memory_space<vmem>>, vector<1x32xf32>
    %4 = vector.broadcast %3 : vector<1x32xf32> to vector<16x32xf32>
    %5 = arith.addf %2, %4 : vector<16x32xf32>
    %c0_5 = arith.constant 0 : index
    %c0_6 = arith.constant 0 : index
    %6 = vector.load %arg4[%c0_5, %c0_6] : memref<16x32xf32, #tpu.memory_space<vmem>>, vector<16x32xf32>
    tpu.vector_store %arg4[%c0_5, %c0_6], %5 {strides = array<i32>} : memref<16x32xf32, #tpu.memory_space<vmem>>, vector<16x32xf32>,
    return
  }
  func.func @transform_0(%arg0: i32) -> (i32, i32) {
    %c0_i32 = arith.constant 0 : i32
    %c0_i32_0 = arith.constant 0 : i32
    return %arg0, %c0_i32 : i32, i32
  }
  func.func @transform_1(%arg0: i32) -> (i32, i32) {
    %c0_i32 = arith.constant 0 : i32
    %c0_i32_0 = arith.constant 0 : i32
    %c0_i32_1 = arith.constant 0 : i32
    return %c0_i32, %c0_i32_0 : i32, i32
  }
  func.func @transform_2(%arg0: i32) -> (i32, i32) {
    %c0_i32 = arith.constant 0 : i32
    %c0_i32_0 = arith.constant 0 : i32
    %c0_i32_1 = arith.constant 0 : i32
    return %c0_i32, %c0_i32_0 : i32, i32
  }
  func.func @transform_3(%arg0: i32) -> (i32, i32) {
    %c0_i32 = arith.constant 0 : i32
    %c0_i32_0 = arith.constant 0 : i32
    return %arg0, %c0_i32 : i32, i32
  }
}

</mosaic_0001>

<bundles_post_ra>
// kernel: tpu_custom_call.1
= control target key start
LH: loop header
LB: loop body
LE: loop exit
PB: predicated region body
PF: predicated region fallthrough
CT: control target
= control target key end

     0   :  { %8 = vsyncpa [#allocation3], 0  ;;  %s958_s0 = inlined_call_operand.hbm [shape: bf16[32,48], index: 0, kind: input, shape index: {}]   ;;  %s959_s1 = inlined_call_operand.hbm [shape: bf16[48,32], index: 1, kind: input, shape index: {}]   ;;  %s960_s2 = inlined_call_operand.hbm [shape: f32[1,32], index: 2, kind: input, shape index: {}]   ;;  %s961_s3 = inlined_call_operand.hbm [shape: f32[32,32], index: 3, kind: output, shape index: {}]  }
   0x1   :  { %10 = vsyncpa [#allocation3 + $0x1], 0 }
   0x2   :  { %11 = vsyncpa [#allocation6], 0 }
   0x3   :  { %12 = vsyncpa [#allocation4], 0 }
   0x4   :  { %14 = vsyncpa [#allocation4 + $0x1], 0  ;;  %s716_s12 = smov 0   ;;  %s718_s13 = smov 0  }
   0x5   :  { %s720_s14 = smov 0   ;;  %s722_s15 = smov 0  }
   0x6 LB: > { %s737_s16 = sadd.s32 4294967295, %s684_s15   ;;  %s411_s17 = sadd.s32 4294967294, %s684_s15   ;;  %s684_s15 = sphi %s722_s15, %s981_s15   ;;  %s680_s14 = sphi %s720_s14, %s980_s14   ;;  %s676_s13 = sphi %s718_s13, %s979_s13   ;;  %s672_s12 = sphi %s716_s12, %s978_s12  }
   0x7   : > { %p40_p0 = scmp.ne.s32.totalorder %s676_s13, %s672_s12  ;;  %p962_p1 = scmp.eq.s32.totalorder %s737_s16, 0 }
   0x8   : > { %p112_p3 = scmp.eq.s32.totalorder %s411_s17, 1  ;;  %p412_p5 = scmp.ge.s32.totalorder %s684_s15, 1 }
   0x9   : > { %p746_p4 = por %p962_p1, %p40_p0  ;;  %p119_p7 = scmp.lt.s32.totalorder %s684_s15, 3 }
   0xa   : > { %p751_p6 = por %p112_p3, %p40_p0  ;;  %s686_s21 = smov [#allocation5]  }
   0xb   : > { %s965_s18 = scalar_select %p746_p4, 1, 0 }
   0xc   : > { %s966_s19 = scalar_select %p751_p6, 1, 0 }
   0xd   : > { %p756_p8 = pnand %p412_p5, %p119_p7  ;;  %s131_s22 = sshll.u32 %s686_s21, 4  ;;  %s760_s22 = int_to_ptr.vmem [resolvable:$true] %s131_s22 }
   0xe   : > { %s687_s24 = smov [#allocation7]   ;;  %s528_s28 = scalar_lea.hbm %s959_s1, 384 }
   0xf   : > { %p463_p9 = pneg %p756_p8  ;;  %s145_s25 = sshll.u32 %s687_s24, 4  ;;  %s771_s25 = int_to_ptr.vmem [resolvable:$true] %s145_s25 }
  0x10   : > { %p529_p12 = scmp.ne.s32.totalorder %s959_s1, %s528_s28  ;;  %p535_p5 = scmp.lt.u32.totalorder %s528_s28, %s959_s1 }
  0x11   : > { %p767_p11 = pnand %p463_p9, %p962_p1 }
  0x13   : > { %p530_p13 = pneg %p767_p11 }
  0x15   : > { %p531_p0 = pnand %p530_p13, %p529_p12 }
  0x17   : > { %p532_p3 = pneg %p531_p0 }
  0x19   : > { %p537_p7 = pnand %p535_p5, %p532_p3 }
  0x1b   : > { %540 = shalt.err (!%p537_p7)
}
  0x1c   : > { %s541_s6 = scalar_lea.vmem %s760_s22, 384  ;;  %p549_p2 = scmp.lt.s32.totalorder %s760_s22, %s760_s22 }
  0x1d   : > { %p542_p9 = scmp.ne.s32.totalorder %s760_s22, %s541_s6  ;;  %p550_p12 = scmp.lt.s32.totalorder %s541_s6, %s541_s6 }
  0x1f   : > { %p544_p10 = pnand %p542_p9, %p530_p13  ;;  %p551_p0 = por %p550_p12, %p549_p2 }
  0x21   : > { %p545_p1 = pneg %p544_p10 }
  0x23   : > { %p552_p6 = pnand %p551_p0, %p545_p1 }
  0x25   : > { %555 = shalt.err (!%p552_p6)
}
  0x26   : > { %s688_s7 = smov 64   ;;  %s689_s8 = smov 4  }
  0x27   : > { %466 = dma.hbm_to_vmem [thread:$0]  (!%p767_p11), %s959_s1, 384, %s760_s22, [#allocation6], %s688_s7, %s688_s7, %s689_s8  }
  0x28   : > { %s556_s21 = scalar_lea.hbm %s960_s2, 16 }
  0x29   : > { %p557_p1 = scmp.ne.s32.totalorder %s960_s2, %s556_s21  ;;  %p563_p10 = scmp.lt.u32.totalorder %s556_s21, %s960_s2 }
  0x2b   : > { %p559_p2 = pnand %p557_p1, %p530_p13 }
  0x2d   : > { %p560_p6 = pneg %p559_p2 }
  0x2f   : > { %p565_p3 = pnand %p563_p10, %p560_p6 }
  0x31   : > { %568 = shalt.err (!%p565_p3)
}
  0x32   : > { %s569_s22 = scalar_lea.vmem %s771_s25, 16  ;;  %s576_s29 = scalar_lea.vmem %s771_s25, 32 }
  0x33   : > { %p570_p5 = scmp.ne.s32.totalorder %s771_s25, %s569_s22  ;;  %p577_p12 = scmp.lt.s32.totalorder %s771_s25, %s771_s25 }
  0x34   : > { %p578_p0 = scmp.lt.s32.totalorder %s576_s29, %s569_s22 }
  0x35   : > { %p572_p7 = pnand %p570_p5, %p530_p13 }
  0x36   : > { %p579_p1 = por %p578_p0, %p577_p12 }
  0x37   : > { %p573_p9 = pneg %p572_p7 }
  0x39   : > { %p580_p2 = pnand %p579_p1, %p573_p9 }
  0x3b   : > { %583 = shalt.err (!%p580_p2)
}
  0x3c   : > { %469 = dma.hbm_to_vmem [thread:$0]  (!%p767_p11), %s960_s2, 16, %s771_s25, [#allocation6]  }
  0x3d   : > { %s830_s5 = sadd.s32 1, %s684_s15   ;;  %s27_s23 = sadd.s32 1, %s680_s14 }
  0x3e   : > { %s24_s6 = ssub.s32 %s684_s15, %s830_s5  ;;  %p34_p13 = scmp.ne.s32.totalorder %s680_s14, %s676_s13 }
  0x3f   : > { %p25_p6 = scmp.eq.s32.totalorder %s24_s6, 0  ;;  %p35_p10 = scmp.eq.s32.totalorder %s684_s15, 0 }
  0x40   : > { %p969_p3 = scmp.eq.s32.totalorder %s737_s16, 1  ;;  %p480_p7 = scmp.lt.s32.totalorder %s684_s15, 2 }
  0x41   : > { %s846_s10 = scalar_select %p25_p6, %s680_s14, %s27_s23  }
  0x42   : > { %p840_p5 = por %p969_p3, %p34_p13  ;;  %p36_p9 = por %p35_p10, %p34_p13 }
  0x43   : > { %s156_s11 = sand.u32 1, %s680_s14   ;;  %s435_s25 = sshll.u32 %s684_s15, 7 }
  0x44   : > { %s970_s9 = scalar_select %p840_p5, 1, 0 }
  0x45   : > { %s416_s17 = sshll.u32 %s156_s11, 3  ;;  %s853_s26 = scalar_lea.hbm %s958_s0, %s435_s25 }
  0x46   : > { %s160_s27 = scalar_lea.vmem [#allocation2], %s416_s17  ;;  %p857_p11 = pnand %p480_p7, %p36_p9 }
  0x47   : > { %s167_s28 = sshll.u32 %s160_s27, 4  ;;  %s861_s29 = scalar_lea.sflag [#allocation3], %s156_s11  ;;  %s855_s28 = int_to_ptr.vmem [resolvable:$true] %s167_s28 }
  0x48   : > { %s584_s30 = scalar_lea.hbm %s853_s26, 128  ;;  %p586_p0 = pneg %p857_p11 }
  0x49   : > { %p585_p12 = scmp.ne.s32.totalorder %s853_s26, %s584_s30  ;;  %s589_s6 = scalar_lea.hbm %s958_s0, 256 }
  0x4a   : > { %p590_p13 = scmp.lt.u32.totalorder %s853_s26, %s958_s0  ;;  %p591_p6 = scmp.lt.u32.totalorder %s589_s6, %s584_s30 }
  0x4b   : > { %p587_p1 = pnand %p586_p0, %p585_p12  ;;  %p593_p3 = scmp.lt.u32.totalorder %s584_s30, %s853_s26 }
  0x4c   : > { %p592_p10 = por %p591_p6, %p590_p13 }
  0x4d   : > { %p588_p2 = pneg %p587_p1 }
  0x4e   : > { %p594_p7 = por %p593_p3, %p592_p10 }
  0x50   : > { %p595_p9 = pnand %p594_p7, %p588_p2 }
  0x52   : > { %598 = shalt.err (!%p595_p9)
}
  0x53   : > { %s599_s11 = scalar_lea.vmem %s855_s28, 128  ;;  %s690_s21 = smov [#allocation2]  }
  0x54   : > { %p600_p12 = scmp.ne.s32.totalorder %s855_s28, %s599_s11  ;;  %s604_s24 = sshll.u32 %s690_s21, 4  ;;  %s605_s24 = int_to_ptr.vmem [resolvable:$false] %s604_s24 }
  0x55   : > { %s606_s27 = scalar_lea.vmem %s605_s24, 256  ;;  %p607_p4 = scmp.lt.s32.totalorder %s855_s28, %s605_s24 }
  0x56   : > { %p602_p1 = pnand %p600_p12, %p586_p0  ;;  %p608_p13 = scmp.lt.s32.totalorder %s606_s27, %s599_s11 }
  0x58   : > { %p603_p5 = pneg %p602_p1  ;;  %p609_p6 = por %p608_p13, %p607_p4 }
  0x5a   : > { %p610_p10 = pnand %p609_p6, %p603_p5 }
  0x5c   : > { %613 = shalt.err (!%p610_p10)
}
  0x5d   : > { %473 = dma.hbm_to_vmem [thread:$0]  (!%p857_p11), %s853_s26, 128, %s855_s28, %s861_s29, %s688_s7, %s688_s7, %s689_s8  }
  0x5e   : > { %179 = sbr.rel (%p756_p8) target bundleno = 349 (0x15d), region = 32  ;;  %s895_s30 = sand.u32 (!%p756_p8), 1, %s676_s13  }
  0x5f   : > { %s420_s4 = sshll.u32 (!%p756_p8), %s895_s30, 3  ;;  %s182_s23 = scalar_lea.sflag (!%p756_p8), [#allocation3], %s895_s30 }
  0x60   : > { %s185_s6 = scalar_lea.vmem (!%p756_p8), [#allocation2], %s420_s4  ;;  %p972_p4 = scmp.ne.s32.totalorder (!%p756_p8), %s965_s18, 0 }
  0x65   : > { %659 = dma.done.wait (%p972_p4), %s182_s23, 128  }
  0x66   : > { %661 = vsyncadd (%p972_p4), %s182_s23, 4294967168  ;;  %p973_p5 = scmp.eq.s32.totalorder %s737_s16, 0 }
  0x68   : > { %663 = dma.done.wait (%p973_p5), [#allocation6], 400   ;;  %p974_p11 = pmov %p973_p5 }
  0x69   : > { %v691_v0 = vmov 0.0   ;;  %vm692_vm0 = vmmov 0   ;;  %v524_v1 = vld [vmem:[#allocation5] sm:$0xff]   ;;  %v525_v2 = vld [vmem:[#allocation5 + $0x8] sm:$0xff]   ;;  %v526_v3 = vld [vmem:[#allocation5 + $0x10] sm:$0xff]   ;;  %vm257_vm1 = vcmask 392192  }
  0x6a   : > { %665 = vsyncadd (%p974_p11), [#allocation6], 4294966896  ;;  %441 = vmatprep.subr.bf16.mxu0 %v691_v0  ;;  %447 = vmatprep.mubr.msk.bf16.mxu0 %vm692_vm0, %v691_v0  ;;  %v527_v4 = vld [vmem:[%s185_s6] sm:$0xff]   ;;  %s423_s18 = sshll.u32 %s895_s30, 4  ;;  %s436_s8 = sshll.u32 %s737_s16, 8  ;;  %vm302_vm2 = vcmask 261120  }
  0x6b   : > { %442 = vmatpush3.bf16.msra.mxu0 %v524_v1  ;;  %v424_v5 = vld [vmem:[#allocation7] ss:$0 sm:$0xff]  ;;  %s215_s20 = scalar_lea.vmem [#allocation8], %s423_s18  ;;  %s914_s22 = scalar_lea.hbm %s961_s3, %s436_s8 }
  0x6c   : > { %443 = vmatprep.subr.bf16.mxu0 %v691_v0  ;;  %s319_s7 = sshll.u32 %s215_s20, 4  ;;  %s306_s16 = scalar_lea.sflag [#allocation4], %s895_s30  ;;  %s909_s7 = int_to_ptr.vmem [resolvable:$true] %s319_s7 }
  0x6d   : > { %s614_s29 = scalar_lea.vmem %s909_s7, 256  ;;  %p975_p0 = scmp.ne.s32.totalorder %s970_s9, 0 }
  0x6e   : > { %p615_p8 = scmp.ne.s32.totalorder %s909_s7, %s614_s29  ;;  %s693_s17 = smov [#allocation8]  }
  0x6f   : > { %444 = vmatpush3.bf16.msra.mxu0 %v525_v2  ;;  %s618_s25 = sshll.u32 %s693_s17, 4  ;;  %s619_s25 = int_to_ptr.vmem [resolvable:$false] %s618_s25 }
  0x70   : > { %445 = vmatprep.subr.bf16.mxu0 %v691_v0  ;;  %p616_p2 = pnand %p615_p8, %p975_p0  ;;  %s620_s11 = scalar_lea.vmem %s619_s25, 512 }
  0x71   : > { %p621_p7 = scmp.lt.s32.totalorder %s909_s7, %s619_s25  ;;  %p622_p9 = scmp.lt.s32.totalorder %s620_s11, %s614_s29 }
  0x72   : > { %p617_p3 = pneg %p616_p2 }
  0x73   : > { %446 = vmatpush3.bf16.msra.mxu0 %v526_v3  ;;  %p623_p12 = por %p622_p9, %p621_p7 }
  0x75   : > { %p624_p1 = pnand %p623_p12, %p617_p3 }
  0x76   : > { %448 = vmatmul.mubr.msk.bf16.vlgmr.msra.gmra.mrb[0].mxu0 %vm257_vm1, %v527_v4 }
 0x149   : > { %v295_v6 = vpop.f32.mrb[0].mxu0 }
 0x14a   : > { %v296_v7 = vadd.f32 %v424_v5, %v295_v6  ;;  %v449_v8 = vpop.f32.mrb[1].mxu0 }
 0x14b   : > { %v298_v9 = vpop.f32.mrb[2].mxu0 }
 0x14c   : > { %303 = vst.msk [vmem:[%s215_s20] sm:$0xff] %vm302_vm2, %v296_v7  ;;  %v299_v10 = vadd.f32 %v424_v5, %v298_v9  ;;  %v450_v11 = vpop.f32.mrb[3].mxu0 }
 0x14e   : > { %304 = vst.msk [vmem:[%s215_s20 + $0x8] sm:$0xff] %vm302_vm2, %v299_v10 }
 0x14f   : > { %627 = shalt.err (!%p624_p1)
}
 0x150   : > { %s628_s21 = scalar_lea.hbm %s914_s22, 256  ;;  %s632_s4 = scalar_lea.hbm %s961_s3, 512 }
 0x151   : > { %p629_p13 = scmp.ne.s32.totalorder %s914_s22, %s628_s21  ;;  %p633_p4 = scmp.lt.u32.totalorder %s914_s22, %s961_s3 }
 0x152   : > { %p634_p5 = scmp.lt.u32.totalorder %s632_s4, %s628_s21  ;;  %p636_p8 = scmp.lt.u32.totalorder %s628_s21, %s914_s22 }
 0x153   : > { %p630_p6 = pnand %p629_p13, %p975_p0 }
 0x154   : > { %p635_p11 = por %p634_p5, %p633_p4 }
 0x155   : > { %p631_p10 = pneg %p630_p6 }
 0x156   : > { %p637_p2 = por %p636_p8, %p635_p11 }
 0x158   : > { %p638_p3 = pnand %p637_p2, %p631_p10 }
 0x15a   : > { %641 = shalt.err (!%p638_p3)
}
 0x15b   : > { %s694_s18 = smov 128   ;;  %s695_s20 = smov 8  }
 0x15c   : > { %461 = dma.vmem_to_hbm [thread:$0]  (%p975_p0), %s909_s7, 256, %s914_s22, %s306_s16, %s694_s18, %s694_s18, %s695_s20  }
 0x15d PF: > { %s334_s8 = sand.u32 1, %s672_s12   ;;  %p976_p7 = scmp.ne.s32.totalorder %s966_s19, 0 }
 0x15e   : > { %p977_p9 = scmp.ge.s32.totalorder %s684_s15, 2  ;;  %s335_s26 = scalar_lea.sflag [#allocation4], %s334_s8 }
 0x160   : > { %p475_p12 = pnand %p977_p9, %p976_p7 }
 0x162   : > { %667 = dma.done.wait (!%p475_p12), %s335_s26, 256  }
 0x163   : > { %669 = vsyncadd (!%p475_p12), %s335_s26, 4294967040  ;;  %p17_p1 = scmp.ge.s32.totalorder %s830_s5, 4   ;;  %s978_s12 = smov %s676_s13 }
 0x164   : > { %s979_s13 = smov %s680_s14  ;;  %s980_s14 = smov %s846_s10 }
 0x165   : > { %s981_s15 = smov %s830_s5  ;;  %19 = sbr.rel (!%p17_p1) target bundleno = 6 (0x6), region = 85 }
 0x16c   :  { %340 = vsyncpa [#allocation3], 1 }
 0x16d   :  { %342 = vsyncpa [#allocation3 + $0x1], 1 }
 0x16e   :  { %343 = vsyncpa [#allocation6], 1 }
 0x16f   :  { %344 = vsyncpa [#allocation4], 1 }
 0x170   :  { %346 = vsyncpa [#allocation4 + $0x1], 1 }

</bundles_post_ra>
